<compile_context>
chip_gen: v5e
topology: v5e:2x2
jax: 0.10.0
libtpu: 0.0.40
codegen_flags: <defaults>
</compile_context>

<pallas_src>
import functools

import jax
import jax.numpy as jnp
from jax.experimental import pallas as pl
from jax.experimental.pallas import tpu as pltpu


def _cdiv(a, b):
    return -(-a // b)


def _round_up(a, b):
    return _cdiv(a, b) * b


def _tpu_config():
    """Generation-tuned (block_target_bytes, vmem_cap_bytes, num_tensorcores)."""
    vmem_phys = 64 << 20
    try:
        vmem_phys = int(pltpu.get_tpu_info().vmem_capacity_bytes)
    except Exception:
        pass
    if vmem_phys >= (100 << 20):
        # v5e / v6e: 128 MiB VMEM, 1 TensorCore -> big blocks, generous scoped VMEM.
        return 12 << 20, 64 << 20, 1
    # v7x-like: 64 MiB VMEM per TensorCore, 2 TCs -> moderate blocks, 48 MiB cap.
    return 5 << 20, 48 << 20, 2


def _gate_from_pooled(pooled, wd, bd, wu, bu, use_mxu):
    """Per-(batch, channel) sigmoid gate from the pooled activations.

    pooled: (Bn, C, 1) float32.
    VPU path (small C):   wu = w_up.T (C, C_int), bu = b_up reshaped to (C, 1).
    MXU path (C >= 128):  wu = w_up (C_int, C),   bu = b_up (1, C).
    Returns (Bn, C, 1) float32.
    """
    if use_mxu:
        p2 = pooled[:, :, 0]                                           # (Bn, C)
        h = jnp.dot(p2, wd, preferred_element_type=jnp.float32,
                    precision=jax.lax.Precision.HIGHEST) + bd          # (Bn, C_int)
        h = jnp.maximum(h, 0.0)
        s = jnp.dot(h, wu, preferred_element_type=jnp.float32,
                    precision=jax.lax.Precision.HIGHEST) + bu          # (Bn, C)
        return jax.nn.sigmoid(s)[:, :, None]                           # (Bn, C, 1)
    prod_d = pooled * wd[None, :, :]                                   # (Bn, C, C_int)
    h = jnp.sum(prod_d, axis=1, keepdims=True)                         # (Bn, 1, C_int)
    h = jnp.maximum(h + bd[None], 0.0)
    prod_u = h * wu[None, :, :]                                        # (Bn, C, C_int)
    s = jnp.sum(prod_u, axis=-1, keepdims=True) + bu[None]             # (Bn, C, 1)
    return jax.nn.sigmoid(s)


def _fused_kernel(x_ref, wd_ref, bd_ref, wu_ref, bu_ref, o_ref, *, inv_hw, use_mxu):
    # x_ref / o_ref: (Bn, C, HW) tile; HW on lanes, C on sublanes.
    x = x_ref[...]
    # Global average pool over the HW lane axis; f32 accumulation fused into the
    # reduce (no materialized f32 copy of the tile when x is bf16).
    pooled = jnp.sum(x, axis=-1, dtype=jnp.float32, keepdims=True) * inv_hw
    gate = _gate_from_pooled(pooled, wd_ref[...], bd_ref[...],
                             wu_ref[...], bu_ref[...], use_mxu)
    o_ref[...] = x * gate.astype(x.dtype)


def _pool_gate_kernel(x_ref, wd_ref, bd_ref, wu_ref, bu_ref, gate_ref, acc_ref,
                      *, hw_total, hw_tile, inv_hw, use_mxu, need_mask):
    # Two-pass fallback, pass 1: pool over the HW grid axis, gate at the end.
    hw_i = pl.program_id(1)

    @pl.when(hw_i == 0)
    def _():
        acc_ref[...] = jnp.zeros_like(acc_ref)

    x = x_ref[...]
    if need_mask:   # HW tail block: zero lanes past HW before accumulating.
        lane = hw_i * hw_tile + jax.lax.broadcasted_iota(
            jnp.int32, (1, 1, hw_tile), 2)
        x = jnp.where(lane < hw_total, x, jnp.zeros_like(x))
    acc_ref[...] += jnp.sum(x, axis=-1, dtype=jnp.float32, keepdims=True)

    @pl.when(hw_i == pl.num_programs(1) - 1)
    def _():
        pooled = acc_ref[...] * inv_hw
        gate_ref[...] = _gate_from_pooled(pooled, wd_ref[...], bd_ref[...],
                                          wu_ref[...], bu_ref[...], use_mxu)


def _scale_kernel(x_ref, gate_ref, o_ref):
    # Two-pass fallback, pass 2: re-read x, scale by the per-(n, c) gate.
    o_ref[...] = x_ref[...] * gate_ref[...].astype(o_ref.dtype)


def se_block(x_nchw, w_down, b_down, w_up, b_up, *, max_block_bytes=None):
    """SEBlock forward (NCHW).

    x_nchw: (N, C, H, W); w_down: (C, C_int); b_down: (1, C_int);
    w_up: (C_int, C); b_up: (1, C).

    For best performance the caller should donate x (jax.jit(...,
    donate_argnums=(0,))) so the output alias does not force a defensive copy.
    max_block_bytes overrides the auto block-size target (testing knob).
    """
    N, C, H, W = x_nchw.shape
    # F.avg_pool2d(x, kernel_size=x.size(3)) == global pool only when H == W.
    assert H == W, "SEBlock expects square spatial inputs (H == W)"
    HW = H * W
    C_int = w_down.shape[1]
    itemsize = jnp.dtype(x_nchw.dtype).itemsize
    inv_hw = 1.0 / float(HW)
    use_mxu = C >= 128   # tiny matmuls on the (idle) MXU once C is MXU-sized

    block_target, vmem_cap, num_tc = _tpu_config()
    if max_block_bytes is not None:
        block_target = int(max_block_bytes)

    # NCHW-native flattening: (N, C, HW) is a free reshape (no transpose).
    x = x_nchw.reshape(N, C, HW)

    # Tiny one-time param relayouts; the layout depends on the gate-math path.
    if use_mxu:
        wu = w_up                      # (C_int, C)
        bu = b_up                      # (1, C)
    else:
        wu = w_up.T                    # (C, C_int)
        bu = b_up.reshape(C, 1)        # (C, 1)

    def _param_specs(index_map):
        return [
            pl.BlockSpec(w_down.shape, index_map),
            pl.BlockSpec(b_down.shape, index_map),
            pl.BlockSpec(wu.shape, index_map),
            pl.BlockSpec(bu.shape, index_map),
        ]

    c_pad = _round_up(C, 8)
    hw_pad = _round_up(HW, 128)
    bytes_per_batch = c_pad * hw_pad * itemsize

    if bytes_per_batch <= block_target:
        # -------- Fused single-pass path --------
        block_n = max(1, min(N, block_target // bytes_per_batch))
        if num_tc >= 2 and N >= 2:
            # At least two grid steps so both TensorCores get work, and prefer
            # an even step count so they stay balanced.
            block_n = min(block_n, _cdiv(N, 2))
            bn = block_n
            while bn > 1 and _cdiv(N, bn) % 2 != 0:
                bn -= 1
            if _cdiv(N, bn) % 2 == 0:
                block_n = bn
        grid_n = _cdiv(N, block_n)

        blk_bytes = block_n * bytes_per_batch
        vmem_limit = int(min(max(4 * blk_bytes + (2 << 20), 8 << 20), vmem_cap))

        kernel = functools.partial(_fused_kernel, inv_hw=inv_hw, use_mxu=use_mxu)
        out = pl.pallas_call(
            kernel,
            out_shape=jax.ShapeDtypeStruct((N, C, HW), x.dtype),
            grid_spec=pltpu.PrefetchScalarGridSpec(
                num_scalar_prefetch=0,
                grid=(grid_n,),
                in_specs=[pl.BlockSpec((block_n, C, HW), lambda n: (n, 0, 0))]
                + _param_specs(lambda n: (0, 0)),
                out_specs=pl.BlockSpec((block_n, C, HW), lambda n: (n, 0, 0)),
            ),
            compiler_params=pltpu.CompilerParams(
                dimension_semantics=("parallel",),
                vmem_limit_bytes=vmem_limit,
            ),
            # Gated output may overwrite x's buffer (caller should donate x).
            input_output_aliases={0: 0},
        )(x, w_down, b_down, wu, bu)
        return out.reshape(N, C, H, W)

    # -------- Two-pass HW-tiled fallback (single batch slab too big) --------
    lanes_budget = max(block_target // max(c_pad * itemsize, 1), 128)
    hw_tile = max(128, min(hw_pad, (lanes_budget // 128) * 128))
    grid_hw = _cdiv(HW, hw_tile)
    need_mask = (HW % hw_tile) != 0
    blk_bytes = c_pad * hw_tile * itemsize
    vmem_limit = int(min(max(4 * blk_bytes + (2 << 20), 8 << 20), vmem_cap))

    x_spec = pl.BlockSpec((1, C, hw_tile), lambda n, h: (n, 0, h))
    gate_spec = pl.BlockSpec((1, C, 1), lambda n, h: (n, 0, 0))

    # Pass 1: global average pool (HW reduction axis) + gate.
    pool_kernel = functools.partial(
        _pool_gate_kernel, hw_total=HW, hw_tile=hw_tile, inv_hw=inv_hw,
        use_mxu=use_mxu, need_mask=need_mask)
    gate = pl.pallas_call(
        pool_kernel,
        out_shape=jax.ShapeDtypeStruct((N, C, 1), jnp.float32),
        grid_spec=pltpu.PrefetchScalarGridSpec(
            num_scalar_prefetch=0,
            grid=(N, grid_hw),
            in_specs=[x_spec] + _param_specs(lambda n, h: (0, 0)),
            out_specs=gate_spec,
            scratch_shapes=[pltpu.VMEM((1, C, 1), jnp.float32)],
        ),
        compiler_params=pltpu.CompilerParams(
            dimension_semantics=("parallel", "arbitrary"),
            vmem_limit_bytes=vmem_limit,
        ),
    )(x, w_down, b_down, wu, bu)

    # Pass 2: re-read x and scale it by the gate.
    out = pl.pallas_call(
        _scale_kernel,
        out_shape=jax.ShapeDtypeStruct((N, C, HW), x.dtype),
        grid_spec=pltpu.PrefetchScalarGridSpec(
            num_scalar_prefetch=0,
            grid=(N, grid_hw),
            in_specs=[x_spec, gate_spec],
            out_specs=x_spec,
        ),
        compiler_params=pltpu.CompilerParams(
            dimension_semantics=("parallel", "parallel"),
            vmem_limit_bytes=vmem_limit,
        ),
        input_output_aliases={0: 0},
    )(x, gate)
    return out.reshape(N, C, H, W)


def se_block_ref(x, w_down, b_down, w_up, b_up):
    """Pure-JAX reference replicating the PyTorch forward (NCHW)."""
    pooled = jnp.mean(x.astype(jnp.float32), axis=(2, 3))                  # (N, C)
    h = jnp.maximum(jnp.dot(pooled, w_down.astype(jnp.float32),
                            precision=jax.lax.Precision.HIGHEST) + b_down, 0.0)
    s = jax.nn.sigmoid(jnp.dot(h, w_up.astype(jnp.float32),
                               precision=jax.lax.Precision.HIGHEST) + b_up)
    return x * s[:, :, None, None].astype(x.dtype)


if __name__ == "__main__":
    def run_case(key, N, C, H, W, C_int, max_block_bytes=None, atol=1e-5, rtol=1e-5):
        k_x, k_wd, k_bd, k_wu, k_bu = jax.random.split(key, 5)
        x = jax.random.normal(k_x, (N, C, H, W), dtype=jnp.float32)
        # PyTorch Conv2d weight (out, in, 1, 1) == (in, out) matmul weight here.
        w_down = jax.random.normal(k_wd, (C, C_int), dtype=jnp.float32) * 0.1
        b_down = jax.random.normal(k_bd, (1, C_int), dtype=jnp.float32) * 0.1
        w_up = jax.random.normal(k_wu, (C_int, C), dtype=jnp.float32) * 0.1
        b_up = jax.random.normal(k_bu, (1, C), dtype=jnp.float32) * 0.1

        ref = se_block_ref(x, w_down, b_down, w_up, b_up)
        fn = jax.jit(se_block, static_argnames=("max_block_bytes",),
                     donate_argnums=(0,))
        out = jax.block_until_ready(
            fn(x, w_down, b_down, w_up, b_up, max_block_bytes=max_block_bytes))
        assert out.shape == (N, C, H, W)
        assert jnp.allclose(out, ref, atol=atol, rtol=rtol), (
            f"mismatch vs reference for case N={N} C={C} H={H}")

    key = jax.random.PRNGKey(0)
    k1, k2, k3, k4 = jax.random.split(key, 4)

    # Primary case (module's nominal small shapes): fused path, VPU gate math.
    run_case(k1, N=2, C=4, H=16, W=16, C_int=8)
    # MXU gate-math path (C >= 128), fused single pass.
    run_case(k2, N=2, C=128, H=8, W=8, C_int=16, atol=1e-4, rtol=1e-4)
    # Forced two-pass HW-tiled fallback; HW=144 also exercises the tail mask.
    run_case(k3, N=2, C=4, H=12, W=12, C_int=8, max_block_bytes=4096)
    # Non-divisible batch tiling (N=3, block_n=2 -> padded last batch block).
    run_case(k4, N=3, C=4, H=16, W=16, C_int=8, max_block_bytes=16384)

    print("KERNEL_OK")
</pallas_src>

<mosaic_0001>
module attributes {stable_mosaic.version = 11 : i64} {
  func.func @_fused_kernel(%arg0: i32, %arg1: memref<1x4x256xf32, #tpu.memory_space<vmem>>, %arg2: memref<4x8xf32, #tpu.memory_space<vmem>>, %arg3: memref<1x8xf32, #tpu.memory_space<vmem>>, %arg4: memref<4x8xf32, #tpu.memory_space<vmem>>, %arg5: memref<4x1xf32, #tpu.memory_space<vmem>>, %arg6: memref<1x4x256xf32, #tpu.memory_space<vmem>>) attributes {dimension_semantics = [#tpu.dimension_semantics<parallel>], iteration_bounds = array<i64: 2>, scalar_prefetch = 0 : i64, scratch_operands = 0 : i64, tpu.core_type = #tpu.core_type<tc>, window_params = [{transform_indices = @transform_0, window_bounds = array<i64: 1, 4, 256>}, {pipeline_mode = #tpu.pipeline_mode<synchronous>, transform_indices = @transform_1, window_bounds = array<i64: 4, 8>}, {pipeline_mode = #tpu.pipeline_mode<synchronous>, transform_indices = @transform_2, window_bounds = array<i64: 1, 8>}, {pipeline_mode = #tpu.pipeline_mode<synchronous>, transform_indices = @transform_3, window_bounds = array<i64: 4, 8>}, {pipeline_mode = #tpu.pipeline_mode<synchronous>, transform_indices = @transform_4, window_bounds = array<i64: 4, 1>}, {transform_indices = @transform_5, window_bounds = array<i64: 1, 4, 256>}]} {
    %c0 = arith.constant 0 : index
    %c0_0 = arith.constant 0 : index
    %c0_1 = arith.constant 0 : index
    %0 = vector.load %arg1[%c0, %c0_0, %c0_1] : memref<1x4x256xf32, #tpu.memory_space<vmem>>, vector<1x4x256xf32>
    %cst = arith.constant dense<0.000000e+00> : vector<1x4xf32>
    %1 = vector.multi_reduction <add>, %0, %cst [2] : vector<1x4x256xf32> to vector<1x4xf32>
    %2 = vector.shape_cast %1 : vector<1x4xf32> to vector<1x4x1xf32>
    %cst_2 = arith.constant 3.906250e-03 : f32
    %3 = vector.broadcast %cst_2 : f32 to vector<1x4x1xf32>
    %4 = arith.mulf %2, %3 : vector<1x4x1xf32>
    %c0_3 = arith.constant 0 : index
    %c0_4 = arith.constant 0 : index
    %5 = vector.load %arg2[%c0_3, %c0_4] : memref<4x8xf32, #tpu.memory_space<vmem>>, vector<4x8xf32>
    %c0_5 = arith.constant 0 : index
    %c0_6 = arith.constant 0 : index
    %6 = vector.load %arg3[%c0_5, %c0_6] : memref<1x8xf32, #tpu.memory_space<vmem>>, vector<1x8xf32>
    %c0_7 = arith.constant 0 : index
    %c0_8 = arith.constant 0 : index
    %7 = vector.load %arg4[%c0_7, %c0_8] : memref<4x8xf32, #tpu.memory_space<vmem>>, vector<4x8xf32>
    %c0_9 = arith.constant 0 : index
    %c0_10 = arith.constant 0 : index
    %8 = vector.load %arg5[%c0_9, %c0_10] : memref<4x1xf32, #tpu.memory_space<vmem>>, vector<4x1xf32>
    %9 = vector.shape_cast %5 : vector<4x8xf32> to vector<1x4x8xf32>
    %10 = vector.broadcast %4 : vector<1x4x1xf32> to vector<1x4x8xf32>
    %11 = arith.mulf %10, %9 : vector<1x4x8xf32>
    %cst_11 = arith.constant dense<0.000000e+00> : vector<1x8xf32>
    %12 = vector.multi_reduction <add>, %11, %cst_11 [1] : vector<1x4x8xf32> to vector<1x8xf32>
    %13 = vector.shape_cast %12 : vector<1x8xf32> to vector<1x1x8xf32>
    %14 = vector.shape_cast %6 : vector<1x8xf32> to vector<1x1x8xf32>
    %15 = arith.addf %13, %14 : vector<1x1x8xf32>
    %cst_12 = arith.constant 0.000000e+00 : f32
    %16 = vector.broadcast %cst_12 : f32 to vector<1x1x8xf32>
    %17 = arith.maximumf %15, %16 : vector<1x1x8xf32>
    %18 = vector.shape_cast %7 : vector<4x8xf32> to vector<1x4x8xf32>
    %19 = vector.broadcast %17 : vector<1x1x8xf32> to vector<1x4x8xf32>
    %20 = arith.mulf %19, %18 : vector<1x4x8xf32>
    %cst_13 = arith.constant dense<0.000000e+00> : vector<1x4xf32>
    %21 = vector.multi_reduction <add>, %20, %cst_13 [2] : vector<1x4x8xf32> to vector<1x4xf32>
    %22 = vector.shape_cast %21 : vector<1x4xf32> to vector<1x4x1xf32>
    %23 = vector.shape_cast %8 : vector<4x1xf32> to vector<1x4x1xf32>
    %24 = arith.addf %22, %23 : vector<1x4x1xf32>
    %25 = arith.negf %24 : vector<1x4x1xf32>
    %26 = math.exp %25 : vector<1x4x1xf32>
    %cst_14 = arith.constant 1.000000e+00 : f32
    %27 = vector.broadcast %cst_14 : f32 to vector<1x4x1xf32>
    %28 = arith.addf %27, %26 : vector<1x4x1xf32>
    %29 = arith.divf %27, %28 : vector<1x4x1xf32>
    %30 = vector.broadcast %29 : vector<1x4x1xf32> to vector<1x4x256xf32>
    %31 = arith.mulf %0, %30 : vector<1x4x256xf32>
    %c0_15 = arith.constant 0 : index
    %c0_16 = arith.constant 0 : index
    %c0_17 = arith.constant 0 : index
    %32 = vector.load %arg6[%c0_15, %c0_16, %c0_17] : memref<1x4x256xf32, #tpu.memory_space<vmem>>, vector<1x4x256xf32>
    tpu.vector_store %arg6[%c0_15, %c0_16, %c0_17], %31 {strides = array<i32>} : memref<1x4x256xf32, #tpu.memory_space<vmem>>, vector<1x4x256xf32>,
    return
  }
  func.func @transform_0(%arg0: i32) -> (i32, i32, i32) {
    %c0_i32 = arith.constant 0 : i32
    %c0_i32_0 = arith.constant 0 : i32
    %c0_i32_1 = arith.constant 0 : i32
    return %arg0, %c0_i32, %c0_i32_0 : i32, i32, i32
  }
  func.func @transform_1(%arg0: i32) -> (i32, i32) {
    %c0_i32 = arith.constant 0 : i32
    %c0_i32_0 = arith.constant 0 : i32
    %c0_i32_1 = arith.constant 0 : i32
    return %c0_i32, %c0_i32_0 : i32, i32
  }
  func.func @transform_2(%arg0: i32) -> (i32, i32) {
    %c0_i32 = arith.constant 0 : i32
    %c0_i32_0 = arith.constant 0 : i32
    %c0_i32_1 = arith.constant 0 : i32
    return %c0_i32, %c0_i32_0 : i32, i32
  }
  func.func @transform_3(%arg0: i32) -> (i32, i32) {
    %c0_i32 = arith.constant 0 : i32
    %c0_i32_0 = arith.constant 0 : i32
    %c0_i32_1 = arith.constant 0 : i32
    return %c0_i32, %c0_i32_0 : i32, i32
  }
  func.func @transform_4(%arg0: i32) -> (i32, i32) {
    %c0_i32 = arith.constant 0 : i32
    %c0_i32_0 = arith.constant 0 : i32
    %c0_i32_1 = arith.constant 0 : i32
    return %c0_i32, %c0_i32_0 : i32, i32
  }
  func.func @transform_5(%arg0: i32) -> (i32, i32, i32) {
    %c0_i32 = arith.constant 0 : i32
    %c0_i32_0 = arith.constant 0 : i32
    %c0_i32_1 = arith.constant 0 : i32
    return %arg0, %c0_i32, %c0_i32_0 : i32, i32, i32
  }
}

</mosaic_0001>

<bundles_post_ra>
// kernel: se_block.1
= control target key start
LH: loop header
LB: loop body
LE: loop exit
PB: predicated region body
PF: predicated region fallthrough
CT: control target
= control target key end

     0   :  { %s415_s18 = smov 0   ;;  %s451_s0 = inlined_call_operand.vmem [shape: f32[2,4,256], index: 0, kind: input, shape index: {}, may-alias: {0,5}]   ;;  %s452_s1 = inlined_call_operand.vmem [shape: f32[4,8], index: 1, kind: input, shape index: {}]   ;;  %s453_s2 = inlined_call_operand.vmem [shape: f32[1,8], index: 2, kind: input, shape index: {}]   ;;  %s454_s3 = inlined_call_operand.vmem [shape: f32[4,8], index: 3, kind: input, shape index: {}]   ;;  %s455_s4 = inlined_call_operand.vmem [shape: f32[4,1], index: 4, kind: input, shape index: {}]   ;;  %s456_s5 = inlined_call_operand.vmem [shape: f32[2,4,256], index: 5, kind: output, shape index: {}, may-alias: {0,5}]  }
   0x1 LB: > { %s345_s19 = sadd.s32 4294967295, %s381_s18   ;;  %p349_p0 = scmp.ge.s32.totalorder %s381_s18, 1  ;;  %s381_s18 = sphi %s415_s18, %s15_s18  }
   0x2   : > { %p187_p1 = scmp.lt.s32.totalorder %s381_s18, 3 }
   0x4   : > { %p188_p2 = pnand %p349_p0, %p187_p1 }
   0x5   : > { %p215_p3 = scmp.lt.s32.totalorder (!%p188_p2), %s345_s19, 1 }
   0x6   : > { %191 = sbr.rel (%p188_p2) target bundleno = 434 (0x1b2), region = 40 }
   0xb   : > { %s458_s19 = smov (!%p215_p3, %s345_s19), 1  ;;  %vm232_vm0 = vcmask 1043456   ;;  %v239_v6 = vld [vmem:[%s452_s1] sm:$0xf]  ;;  %vm244_vm1 = vcmask 60416   ;;  %v383_v24 = vmov 0  }
   0xc   : > { %s357_s20 = sshll.u32 %s458_s19, 3  ;;  %v240_v16 = vld [vmem:[%s453_s2] sm:$0x1]  ;;  %369 = vset.pattern.permute.xlu1 %v383_v24  ;;  %370 = vset.pattern.permute.xlu0 %v383_v24  ;;  %v384_v41 = vmov 839922192  }
   0xd   : > { %s219_s23 = scalar_lea.vmem %s451_s0, %s357_s20  ;;  %v241_v20 = vld [vmem:[%s454_s3] sm:$0xf]  ;;  %v284_v42 = vunpack.c.l.s4 %v384_v41  ;;  %s224_s9 = scalar_lea.vmem %s456_s5, %s357_s20 }
   0xe   : > { %v225_v0 = vld [vmem:[%s219_s23] sm:$0xff] }
   0xf   : > { %227 = vst [vmem:[#allocation1] ss:$2 sm:$0xff] %v225_v0  ;;  %v242_v25 = vld [vmem:[%s455_s4] sm:$0xf]  ;;  %v285_v43 = vunpack.c.0.s8 %v284_v42 }
  0x16   : > { %v228_v1 = vld.sshfl [vmem:[#allocation1] sm:$0xff pattern:$0x75316420]  ;;  %v229_v2 = vld.sshfl [vmem:[#allocation1 + $0x8] sm:$0xff pattern:$0x75316420] }
  0x17   : > { %v233_v3 = vsel %vm232_vm0, %v228_v1, 0.0  ;;  %v234_v4 = vsel %vm232_vm0, %v229_v2, 0.0 }
  0x18   : > { %v235_v5 = vadd.f32 %v234_v4, %v233_v3 }
  0x1a   : > { %236 = vadd.xlane.f32.xlu0 %v235_v5 }
  0x8d   : > { %v237_v7 = vpop.xlane.xlu0 %236 }
  0x8e   : > { %v238_v8 = vmul.f32 0.00390625, %v237_v7 }
  0x90   : > { %v243_v9 = vmul.f32 %v239_v6, %v238_v8 }
  0x92   : > { %v245_v10 = vsel %vm244_vm1, %v243_v9, 0.0 }
  0x93   : > { %v246_v11 = vrot.slane %v245_v10, 4 }
  0x95   : > { %v247_v12 = vadd.f32 %v246_v11, %v245_v10 }
  0x97   : > { %v248_v13 = vrot.slane %v247_v12, 2 }
  0x99   : > { %v249_v14 = vadd.f32 %v248_v13, %v247_v12 }
  0x9b   : > { %v250_v15 = vrot.slane %v249_v14, 1 }
  0x9d   : > { %v251_v17 = vadd.f32 %v250_v15, %v249_v14 }
  0x9f   : > { %v252_v18 = vadd.f32 %v251_v17, %v240_v16 }
  0xa1   : > { %v253_v19 = vmax.f32 %v252_v18, 0.0 }
  0xa3   : > { %v254_v21 = vperm.slane %v253_v19, 0 }
  0xa5   : > { %v255_v22 = vmul.f32 %v254_v21, %v241_v20 }
  0xa7   : > { %v256_v23 = vsel %vm244_vm1, %v255_v22, 0.0 }
  0xa8   : > { %257 = vadd.xlane.f32.xlu0 %v256_v23 }
 0x11b   : > { %v258_v26 = vpop.xlane.xlu0 %257 }
 0x11c   : > { %v259_v27 = vadd.f32 %v258_v26, %v242_v25 }
 0x11e   : > { %v354_v28 = vmul.f32 -1.442695, %v259_v27 }
 0x120   : > { %371 = vpow2.f32 %v354_v28 }
 0x126   : > { %v372_v29 = vpop.eup %371 }
 0x127   : > { %v263_v30 = vadd.f32 1.0, %v372_v29 }
 0x129   : > { %373 = vrcp.f32 %v263_v30  ;;  %v275_v34 = vand.u32 2147483648, %v263_v30  ;;  %v273_v36 = vand.u32 2147483647, %v263_v30  ;;  %vm269_vm3 = vweird.f32 %v263_v30 }
 0x12b   : > { %v276_v38 = vor.u32 1.1754944e-38, %v275_v34  ;;  %vm274_vm5 = vcmp.eq.f32.partialorder %v273_v36, 8.507059e+37 }
 0x12f   : > { %v374_v31 = vpop.eup %373 }
 0x130   : > { %v265_v32 = vmul.f32 %v374_v31, %v263_v30  ;;  %vm270_vm2 = vweird.f32 %v374_v31 }
 0x131   : > { %vm271_vm4 = vmor %vm269_vm3, %vm270_vm2 }
 0x132   : > { %v266_v33 = vsub.f32 1.0, %v265_v32 }
 0x134   : > { %v267_v35 = vmul.f32 %v374_v31, %v266_v33 }
 0x136   : > { %v268_v37 = vadd.f32 %v374_v31, %v267_v35 }
 0x138   : > { %v272_v39 = vsel %vm271_vm4, %v374_v31, %v268_v37 }
 0x139   : > { %v277_v40 = vsel %vm274_vm5, %v276_v38, %v272_v39 }
 0x13a   : > { %281 = vperm.xlu1 %369, %v277_v40  }
 0x1ac   : > { %v282_v44 = vpop.permute.xlu1 %281 }
 0x1ad   : > { %v286_v45 = vperm.slane %v282_v44, %v285_v43 }
 0x1af   : > { %v288_v46 = vmul.f32 %v286_v45, %v225_v0 }
 0x1b1   : > { %289 = vst [vmem:[%s224_s9] sm:$0xff] %v288_v46 }
 0x1b2 PF: > { %s15_s18 = sadd.s32 1, %s381_s18  }
 0x1b3   : > { %p12_p4 = scmp.ge.s32.totalorder %s15_s18, 4  }
 0x1b5   :  { %14 = sbr.rel (!%p12_p4) target bundleno = 1 (0x1), region = 70 }

</bundles_post_ra>
